<compile_context>
chip_gen: v5e
topology: v5e:2x2
jax: 0.10.0
libtpu: 0.0.40
codegen_flags: <defaults>
</compile_context>

<pallas_src>
import jax
import jax.numpy as jnp
from jax.experimental import pallas as pl
from jax.experimental.pallas import tpu as pltpu

_LANES = 128
_SUBLANES = 8


def _round_up(n: int, m: int) -> int:
    return ((n + m - 1) // m) * m


def _make_stream_kernel(tile_rows, rows_total, chunks_per_core, need_mask):
    """Streaming sum-of-squared-differences over the lane-dense x slabs."""

    def kernel(xa_ref, xb_ref, out_ref, acc_ref):
        i = pl.program_id(1)

        xa = xa_ref[...].astype(jnp.float32)
        xb = xb_ref[...].astype(jnp.float32)
        d = xa - xb
        sq = d * d                                           # (tile_rows, 128)

        if need_mask:
            # Global row index of each element; rows past the slab end (partial
            # last block or a clamped duplicate block) contribute exactly 0.
            logical_block = pl.program_id(0) * chunks_per_core + i
            row_ids = (logical_block * tile_rows +
                       jax.lax.broadcasted_iota(jnp.int32, (tile_rows, _LANES), 0))
            sq = jnp.where(row_ids < rows_total, sq, jnp.float32(0.0))

        if tile_rows % _SUBLANES == 0:
            @pl.when(i == 0)
            def _init():
                acc_ref[...] = jnp.zeros_like(acc_ref)

            # Pure vreg adds: (tile,128)->(tile/8,8,128) matches the native
            # vreg tiling, so the reshape is a no-op relayout.
            acc_ref[...] += jnp.sum(
                sq.reshape(tile_rows // _SUBLANES, _SUBLANES, _LANES), axis=0)

            @pl.when(i == pl.num_programs(1) - 1)
            def _finalize():
                # One cross-sublane reduce per core; the cross-lane reduce is
                # deferred to the tiny epilogue kernel.
                out_ref[...] = jnp.sum(acc_ref[...], axis=0, keepdims=True)
        else:
            # Single-block fallback (rows < tile limit and not a multiple of 8):
            # by construction the grid is (1, 1), reduce straight into the output.
            out_ref[...] = jnp.sum(sq, axis=0, keepdims=True)

    return kernel


def _make_epilogue_kernel(batch, latent, inv_n_x, success_weight):
    """Combine SSE partials, softmax the head weights, emit the reward."""

    def kernel(part_ref, w_ref, mu_ref, lv_ref, out_ref):
        sse = jnp.sum(part_ref[...])
        success = sse * jnp.float32(inv_n_x)          # == mse_loss(x_a, x_b)

        # Softmax over the batch axis (lane axis).  Padded lanes (>= batch) are
        # masked explicitly, so the pad value never matters for any dtype.
        w = w_ref[...].astype(jnp.float32)                       # (1, Bp)
        lane_ids = jax.lax.broadcasted_iota(jnp.int32, w.shape, 1)
        valid = lane_ids < batch
        w_max = jnp.max(jnp.where(valid, w, jnp.float32(-1e30)),
                        axis=-1, keepdims=True)
        w_exp = jnp.where(valid, jnp.exp(w - w_max), jnp.float32(0.0))
        denom = jnp.sum(w_exp, axis=-1, keepdims=True)
        w_sm = w_exp * pl.reciprocal(denom)                      # (1, Bp)
        sum_w = jnp.sum(w_sm)                                    # == 1 up to fp

        # surprise = exp(log_var) + mu^2, batch on the lane axis.  Zero-padded
        # lanes give surprise == 1 but w_sm == 0 there, so they contribute 0.
        mu = mu_ref[...].astype(jnp.float32)                     # (L, Bp)
        lv = lv_ref[...].astype(jnp.float32)                     # (L, Bp)
        surprise = jnp.exp(lv) + mu * mu

        # sum((surprise + success) * w), w broadcast over the L latent dims:
        #   == sum(surprise * w) + success * L * sum(w)
        weighted = jnp.sum(surprise * w_sm)
        total_loss = weighted + (jnp.float32(success_weight) * success
                                 * jnp.float32(latent) * sum_w)
        out_ref[0, 0] = -total_loss

    return kernel


def reward_calculator_khead_vae(x_a, x_b, chosen_weights, chosen_means,
                                chosen_log_vars, *, max_x_tile_rows=8192,
                                num_stream_cores=2):
    """Pallas TPU implementation of RewardCalculatorKHeadVAE.forward.

    Returns {'total_reward': scalar} like the PyTorch module.
    """
    assert x_a.shape == x_b.shape
    assert max_x_tile_rows % _SUBLANES == 0
    B, L = chosen_means.shape
    assert chosen_log_vars.shape == (B, L)
    assert chosen_weights.shape[0] == B

    n_x = int(x_a.size)

    # ---- lane-dense streaming layout for the MSE term (no padding copies) ---
    flat_a = jnp.reshape(x_a, (-1,))
    flat_b = jnp.reshape(x_b, (-1,))
    n_main = (n_x // _LANES) * _LANES
    n_rem = n_x - n_main

    rem_sse = None
    if n_rem > 0:
        # Tiny (<128 element) tail: reduce it in plain JAX in the wrapper and
        # fold it into the kernel partials.
        ra = flat_a[n_main:].astype(jnp.float32)
        rb = flat_b[n_main:].astype(jnp.float32)
        rem_sse = jnp.sum(jnp.square(ra - rb))

    if n_main > 0:
        rows = n_main // _LANES
        if n_rem > 0:
            main_a = jnp.reshape(flat_a[:n_main], (rows, _LANES))
            main_b = jnp.reshape(flat_b[:n_main], (rows, _LANES))
        else:
            main_a = jnp.reshape(flat_a, (rows, _LANES))  # pure bitcast, no copy
            main_b = jnp.reshape(flat_b, (rows, _LANES))

        # Largest streamed block that amortizes the ~0.35us/step overhead and
        # keeps 2 inputs x 2 buffers x 4 MiB = 16 MiB << 48 MiB VMEM limit.
        tile_rows = max_x_tile_rows if rows > max_x_tile_rows else rows
        rows_blocks = -(-rows // tile_rows)
        nc = num_stream_cores if rows_blocks >= 2 else 1
        chunks = -(-rows_blocks // nc)
        need_mask = (nc * chunks * tile_rows) != rows

        def slab_map(c, i):
            # Contiguous block range per core; a possible trailing fully
            # out-of-range block is clamped to the last valid block and is
            # fully zeroed by the in-kernel row mask.
            return (jnp.minimum(c * chunks + i, rows_blocks - 1), 0)

        partials = pl.pallas_call(
            _make_stream_kernel(tile_rows, rows, chunks, need_mask),
            out_shape=jax.ShapeDtypeStruct((nc, _LANES), jnp.float32),
            grid_spec=pltpu.PrefetchScalarGridSpec(
                num_scalar_prefetch=0,
                grid=(nc, chunks),
                in_specs=[
                    pl.BlockSpec((tile_rows, _LANES), slab_map),   # x_a slab
                    pl.BlockSpec((tile_rows, _LANES), slab_map),   # x_b slab
                ],
                out_specs=pl.BlockSpec((1, _LANES), lambda c, i: (c, 0)),
                scratch_shapes=[pltpu.VMEM((_SUBLANES, _LANES), jnp.float32)],
            ),
            compiler_params=pltpu.CompilerParams(
                # Core-split the chunk stream (2x on v7x), serial reduce within.
                dimension_semantics=("parallel", "arbitrary"),
                vmem_limit_bytes=48 * 1024 * 1024,
            ),
        )(main_a, main_b)
    else:
        partials = jnp.zeros((1, _LANES), jnp.float32)

    if rem_sse is not None:
        partials = partials.at[0, 0].add(rem_sse)

    # ---- tiny epilogue: combine partials + softmax / surprise / weighting ---
    Bp = _round_up(B, _LANES)
    w_row = jnp.pad(jnp.reshape(chosen_weights, (1, B)), ((0, 0), (0, Bp - B)))
    mu_t = jnp.pad(jnp.transpose(chosen_means), ((0, 0), (0, Bp - B)))
    lv_t = jnp.pad(jnp.transpose(chosen_log_vars), ((0, 0), (0, Bp - B)))

    nc_out = partials.shape[0]
    out = pl.pallas_call(
        _make_epilogue_kernel(batch=B, latent=L, inv_n_x=1.0 / float(n_x),
                              success_weight=1.0),
        out_shape=jax.ShapeDtypeStruct((1, 1), jnp.float32),
        grid_spec=pltpu.PrefetchScalarGridSpec(
            num_scalar_prefetch=0,
            grid=(1,),
            in_specs=[
                pl.BlockSpec((nc_out, _LANES), lambda i: (0, 0)),  # SSE partials
                pl.BlockSpec((1, Bp), lambda i: (0, 0)),           # weights row
                pl.BlockSpec((L, Bp), lambda i: (0, 0)),           # means^T
                pl.BlockSpec((L, Bp), lambda i: (0, 0)),           # log_vars^T
            ],
            out_specs=pl.BlockSpec(memory_space=pltpu.MemorySpace.SMEM),
        ),
        compiler_params=pltpu.CompilerParams(
            dimension_semantics=("arbitrary",),
            vmem_limit_bytes=32 * 1024 * 1024,
        ),
    )(partials, w_row, mu_t, lv_t)

    return {"total_reward": out[0, 0]}


def _reference(x_a, x_b, chosen_weights, chosen_means, chosen_log_vars):
    # Pure-JAX reference: literal transcription of the PyTorch forward.
    B = chosen_weights.shape[0]
    w = jax.nn.softmax(
        jnp.reshape(chosen_weights, (B, 1)).astype(jnp.float32), axis=0)
    variance = jnp.exp(chosen_log_vars.astype(jnp.float32))
    surprise = variance + jnp.square(chosen_means.astype(jnp.float32))
    success = jnp.mean(jnp.square(x_a.astype(jnp.float32)
                                  - x_b.astype(jnp.float32)))
    total_loss = jnp.sum((surprise + success * 1.0) * w)
    return -total_loss


if __name__ == "__main__":
    key = jax.random.PRNGKey(0)
    k1, k2, k3, k4, k5 = jax.random.split(key, 5)

    B, D, L = 8, 128, 4   # batch of points, point dim, latent dim
    x_a = jax.random.normal(k1, (B, D), dtype=jnp.float32)           # points
    x_b = jax.random.normal(k2, (B, D), dtype=jnp.float32)           # decoded
    chosen_weights = jax.random.normal(k3, (B,), dtype=jnp.float32)
    chosen_means = jax.random.normal(k4, (B, L), dtype=jnp.float32)
    chosen_log_vars = 0.1 * jax.random.normal(k5, (B, L), dtype=jnp.float32)

    result = reward_calculator_khead_vae(x_a, x_b, chosen_weights,
                                         chosen_means, chosen_log_vars)
    total_reward = jax.block_until_ready(result["total_reward"])

    ref = jax.block_until_ready(
        _reference(x_a, x_b, chosen_weights, chosen_means, chosen_log_vars))
    assert jnp.allclose(total_reward, ref, rtol=1e-4, atol=1e-4), (total_reward, ref)

    print("KERNEL_OK")
</pallas_src>

<mosaic_0001>
module attributes {stable_mosaic.version = 11 : i64} {
  func.func @kernel(%arg0: i32, %arg1: i32, %arg2: memref<8x128xf32, #tpu.memory_space<vmem>>, %arg3: memref<8x128xf32, #tpu.memory_space<vmem>>, %arg4: memref<1x128xf32, #tpu.memory_space<vmem>>, %arg5: memref<8x128xf32, #tpu.memory_space<vmem>>) attributes {dimension_semantics = [#tpu.dimension_semantics<parallel>, #tpu.dimension_semantics<arbitrary>], iteration_bounds = array<i64: 1, 1>, scalar_prefetch = 0 : i64, scratch_operands = 1 : i64, tpu.core_type = #tpu.core_type<tc>, window_params = [{transform_indices = @transform_0, window_bounds = array<i64: 8, 128>}, {transform_indices = @transform_1, window_bounds = array<i64: 8, 128>}, {transform_indices = @transform_2, window_bounds = array<i64: 1, 128>}]} {
    %c0 = arith.constant 0 : index
    %c0_0 = arith.constant 0 : index
    %0 = vector.load %arg2[%c0, %c0_0] : memref<8x128xf32, #tpu.memory_space<vmem>>, vector<8x128xf32>
    %c0_1 = arith.constant 0 : index
    %c0_2 = arith.constant 0 : index
    %1 = vector.load %arg3[%c0_1, %c0_2] : memref<8x128xf32, #tpu.memory_space<vmem>>, vector<8x128xf32>
    %2 = arith.subf %0, %1 : vector<8x128xf32>
    %3 = arith.mulf %2, %2 : vector<8x128xf32>
    %c0_i32 = arith.constant 0 : i32
    %4 = arith.cmpi eq, %arg1, %c0_i32 : i32
    %5 = arith.extui %4 : i1 to i32
    %c0_i32_3 = arith.constant 0 : i32
    %6 = arith.cmpi ne, %5, %c0_i32_3 : i32
    scf.if %6 {
      %cst_10 = arith.constant 0.000000e+00 : f32
      %15 = vector.broadcast %cst_10 : f32 to vector<8x128xf32>
      %c0_11 = arith.constant 0 : index
      %c0_12 = arith.constant 0 : index
      %16 = vector.load %arg5[%c0_11, %c0_12] : memref<8x128xf32, #tpu.memory_space<vmem>>, vector<8x128xf32>
      tpu.vector_store %arg5[%c0_11, %c0_12], %15 {strides = array<i32>} : memref<8x128xf32, #tpu.memory_space<vmem>>, vector<8x128xf32>,
    } else {
    }
    %c0_4 = arith.constant 0 : index
    %c0_5 = arith.constant 0 : index
    %7 = vector.load %arg5[%c0_4, %c0_5] : memref<8x128xf32, #tpu.memory_space<vmem>>, vector<8x128xf32>
    %8 = vector.shape_cast %3 : vector<8x128xf32> to vector<1x8x128xf32>
    %cst = arith.constant dense<0.000000e+00> : vector<8x128xf32>
    %9 = vector.multi_reduction <add>, %8, %cst [0] : vector<1x8x128xf32> to vector<8x128xf32>
    %10 = arith.addf %7, %9 : vector<8x128xf32>
    %c0_6 = arith.constant 0 : index
    %c0_7 = arith.constant 0 : index
    %11 = vector.load %arg5[%c0_6, %c0_7] : memref<8x128xf32, #tpu.memory_space<vmem>>, vector<8x128xf32>
    tpu.vector_store %arg5[%c0_6, %c0_7], %10 {strides = array<i32>} : memref<8x128xf32, #tpu.memory_space<vmem>>, vector<8x128xf32>,
    %c0_i32_8 = arith.constant 0 : i32
    %12 = arith.cmpi eq, %arg1, %c0_i32_8 : i32
    %13 = arith.extui %12 : i1 to i32
    %c0_i32_9 = arith.constant 0 : i32
    %14 = arith.cmpi ne, %13, %c0_i32_9 : i32
    scf.if %14 {
      %c0_10 = arith.constant 0 : index
      %c0_11 = arith.constant 0 : index
      %15 = vector.load %arg5[%c0_10, %c0_11] : memref<8x128xf32, #tpu.memory_space<vmem>>, vector<8x128xf32>
      %cst_12 = arith.constant dense<0.000000e+00> : vector<128xf32>
      %16 = vector.multi_reduction <add>, %15, %cst_12 [0] : vector<8x128xf32> to vector<128xf32>
      %17 = vector.shape_cast %16 : vector<128xf32> to vector<1x128xf32>
      %c0_13 = arith.constant 0 : index
      %c0_14 = arith.constant 0 : index
      %18 = vector.load %arg4[%c0_13, %c0_14] : memref<1x128xf32, #tpu.memory_space<vmem>>, vector<1x128xf32>
      tpu.vector_store %arg4[%c0_13, %c0_14], %17 {strides = array<i32>} : memref<1x128xf32, #tpu.memory_space<vmem>>, vector<1x128xf32>,
    } else {
    }
    return
  }
  func.func @transform_0(%arg0: i32, %arg1: i32) -> (i32, i32) {
    %c1_i32 = arith.constant 1 : i32
    %0 = arith.muli %arg0, %c1_i32 : i32
    %1 = arith.addi %0, %arg1 : i32
    %c0_i32 = arith.constant 0 : i32
    %2 = arith.minsi %1, %c0_i32 : i32
    %c0_i32_0 = arith.constant 0 : i32
    %c0_i32_1 = arith.constant 0 : i32
    return %2, %c0_i32_0 : i32, i32
  }
  func.func @transform_1(%arg0: i32, %arg1: i32) -> (i32, i32) {
    %c1_i32 = arith.constant 1 : i32
    %0 = arith.muli %arg0, %c1_i32 : i32
    %1 = arith.addi %0, %arg1 : i32
    %c0_i32 = arith.constant 0 : i32
    %2 = arith.minsi %1, %c0_i32 : i32
    %c0_i32_0 = arith.constant 0 : i32
    %c0_i32_1 = arith.constant 0 : i32
    return %2, %c0_i32_0 : i32, i32
  }
  func.func @transform_2(%arg0: i32, %arg1: i32) -> (i32, i32) {
    %c0_i32 = arith.constant 0 : i32
    %c0_i32_0 = arith.constant 0 : i32
    return %arg0, %c0_i32 : i32, i32
  }
}

</mosaic_0001>

<bundles_post_ra>
// kernel: tpu_custom_call.1
= control target key start
LH: loop header
LB: loop body
LE: loop exit
PB: predicated region body
PF: predicated region fallthrough
CT: control target
= control target key end

     0   :  { %7 = vsyncpa [#allocation4], 0  ;;  %s210_s0 = inlined_call_operand.hbm [shape: f32[8,128], index: 0, kind: input, shape index: {}]   ;;  %s211_s1 = inlined_call_operand.hbm [shape: f32[8,128], index: 1, kind: input, shape index: {}]   ;;  %s212_s2 = inlined_call_operand.hbm [shape: f32[1,128], index: 2, kind: output, shape index: {}]  }
   0x1   :  { %8 = vsyncpa [#allocation7], 0 }
   0x2   :  { %9 = vsyncpa [#allocation5], 0  ;;  %s20_s11 = sshll.u32 %s210_s0, 4  ;;  %s183_s12 = smov [#allocation3]   ;;  %s21_s11 = int_to_ptr.hbm [resolvable:$true] %s20_s11 }
   0x3   :  { %s22_s13 = sshll.u32 %s183_s12, 4  ;;  %s36_s16 = sshll.u32 %s211_s1, 4  ;;  %s23_s13 = int_to_ptr.vmem [resolvable:$true] %s22_s13  ;;  %s37_s16 = int_to_ptr.hbm [resolvable:$true] %s36_s16 }
   0x4   :  { %25 = dma.hbm_to_vmem [thread:$0]  %s21_s11, 128, %s23_s13, [#allocation4]  }
   0x5   :  { %s184_s17 = smov [#allocation6]  }
   0x6   :  { %s38_s18 = sshll.u32 %s184_s17, 4  ;;  %s39_s18 = int_to_ptr.vmem [resolvable:$true] %s38_s18 }
   0x7   :  { %41 = dma.hbm_to_vmem [thread:$0]  %s37_s16, 128, %s39_s18, [#allocation7]  }
   0x8   :  { %177 = dma.done.wait [#allocation4], 128  }
   0x9   :  { %178 = vsyncadd [#allocation4], 4294967168 }
   0xa   :  { %179 = dma.done.wait [#allocation7], 128  }
   0xb   :  { %180 = vsyncadd [#allocation7], 4294967168  ;;  %v56_v0 = vld [vmem:[#allocation3] sm:$0xff]  ;;  %v57_v1 = vld [vmem:[#allocation6] sm:$0xff]  ;;  %s185_s0 = smov [#allocation8]   ;;  %s87_s21 = sshll.u32 %s212_s2, 4  ;;  %s88_s21 = int_to_ptr.hbm [resolvable:$true] %s87_s21 }
   0xc   :  { %v58_v2 = vsub.f32 %v56_v0, %v57_v1  ;;  %s85_s1 = sshll.u32 %s185_s0, 4  ;;  %s86_s1 = int_to_ptr.vmem [resolvable:$true] %s85_s1 }
   0xe   :  { %v59_v3 = vmul.f32 %v58_v2, %v58_v2 }
  0x10   :  { %v73_v4 = vrot.slane %v59_v3, 4 }
  0x12   :  { %v74_v5 = vadd.f32 %v73_v4, %v59_v3 }
  0x14   :  { %v75_v6 = vrot.slane %v74_v5, 2 }
  0x16   :  { %v76_v7 = vadd.f32 %v75_v6, %v74_v5 }
  0x18   :  { %v77_v8 = vrot.slane %v76_v7, 1 }
  0x1a   :  { %v78_v9 = vadd.f32 %v77_v8, %v76_v7 }
  0x1c   :  { %79 = vst [vmem:[#allocation8] sm:$0x1] %v78_v9 }
  0x1d   :  { %90 = dma.vmem_to_hbm [thread:$0]  %s86_s1, 16, %s88_s21, [#allocation5]  }
  0x1e   :  { %181 = dma.done.wait [#allocation5], 16  }
  0x1f   :  { %182 = vsyncadd [#allocation5], 4294967280 }
  0x20   :  { %95 = vsyncpa [#allocation4], 1 }
  0x21   :  { %96 = vsyncpa [#allocation7], 1 }
  0x22   :  { %97 = vsyncpa [#allocation5], 1 }

</bundles_post_ra>
